<compile_context>
chip_gen: v7x
topology: tpu7x:2x2x1
jax: 0.10.0
libtpu: 0.0.40
codegen_flags: <defaults>
</compile_context>

<pallas_src>
import jax
import jax.numpy as jnp
from jax.experimental import pallas as pl
from jax.experimental.pallas import tpu as pltpu


def pinn_kernel(x_ref, w1_ref, b1_ref, w2_ref, b2_ref, w3_ref, b3_ref, o_ref):
    x = x_ref[...]          # (2, T)   batch on lanes
    w1 = w1_ref[...]        # (20, 2)

    # Layer 1 (in=2): degenerate K=2 matmul -> plain VPU FMAs + EUP tanh.
    h1 = jnp.tanh(
        w1[:, 0:1] * x[0:1, :] + w1[:, 1:2] * x[1:2, :] + b1_ref[...]
    )  # (20, T)

    # Layer 2 (20x20): the only matmul worth the MXU.
    h2 = jnp.tanh(
        jnp.dot(w2_ref[...], h1, preferred_element_type=jnp.float32) + b2_ref[...]
    )  # (20, T)

    # Layer 3 (20 -> 1): VPU multiply + sublane reduce instead of a 1-row matmul.
    out = jnp.sum(w3_ref[...] * h2, axis=0, keepdims=True) + b3_ref[...]  # (1, T)

    o_ref[...] = out.astype(o_ref.dtype)


def pinn_forward(x, params, *, tile_n=2048):
    """x: (N, 2) float32. params: PyTorch-style ((out,in) weight, (out,) bias)
    triples. Returns (N, 1) float32."""
    (w1, b1), (w2, b2), (w3, b3) = params
    N, f_in = x.shape
    assert f_in == 2

    H1 = w1.shape[0]   # 20
    H2 = w2.shape[0]   # 20
    F_out = w3.shape[0]  # 1
    assert F_out == 1

    # Pad the batch to a multiple of 128 lanes, pick a tile that divides it.
    n_pad = max(pl.cdiv(N, 128) * 128, 128)
    tile = min(tile_n, n_pad)
    n_pad = pl.cdiv(n_pad, tile) * tile

    # Batch-on-lanes layout: (2, n_pad). Zero padding is harmless (sliced off).
    x_t = jnp.zeros((f_in, n_pad), jnp.float32).at[:, :N].set(x.T)

    # Kernel-layout params: weights (out, in) except w3 as a (20, 1) column;
    # biases as (out, 1) columns (lane-direction broadcast inside the kernel).
    w1_k = w1.astype(jnp.float32)                 # (20, 2)
    b1_k = b1.reshape(H1, 1).astype(jnp.float32)  # (20, 1)
    w2_k = w2.astype(jnp.float32)                 # (20, 20)
    b2_k = b2.reshape(H2, 1).astype(jnp.float32)  # (20, 1)
    w3_k = w3.reshape(F_out, H2).T.astype(jnp.float32)  # (20, 1)
    b3_k = b3.reshape(F_out, 1).astype(jnp.float32)     # (1, 1)

    grid = (n_pad // tile,)

    def rep(shape):
        # Tiny weight/bias blocks: full extent, replicated across the grid.
        return pl.BlockSpec(shape, lambda i: (0, 0))

    out = pl.pallas_call(
        pinn_kernel,
        out_shape=jax.ShapeDtypeStruct((1, n_pad), jnp.float32),
        grid_spec=pltpu.PrefetchScalarGridSpec(
            num_scalar_prefetch=0,
            grid=grid,
            in_specs=[
                pl.BlockSpec((f_in, tile), lambda i: (0, i)),  # x tile (2, T)
                rep((H1, f_in)), rep((H1, 1)),                 # layer 1
                rep((H2, H1)), rep((H2, 1)),                   # layer 2
                rep((H2, F_out)), rep((F_out, 1)),             # layer 3
            ],
            out_specs=pl.BlockSpec((1, tile), lambda i: (0, i)),  # lane-dense
        ),
        compiler_params=pltpu.CompilerParams(
            dimension_semantics=("parallel",),
        ),
    )(x_t, w1_k, b1_k, w2_k, b2_k, w3_k, b3_k)

    return out[0, :N].reshape(N, F_out)


def init_params(key):
    """Deterministic init matching PyTorch nn.Linear: weight (out, in),
    bias (out,), uniform(-1/sqrt(fan_in), 1/sqrt(fan_in))."""
    dims = [(2, 20), (20, 20), (20, 1)]
    params = []
    for (fan_in, fan_out) in dims:
        key, kw, kb = jax.random.split(key, 3)
        bound = 1.0 / jnp.sqrt(fan_in)
        w = jax.random.uniform(kw, (fan_out, fan_in), jnp.float32, -bound, bound)
        b = jax.random.uniform(kb, (fan_out,), jnp.float32, -bound, bound)
        params.append((w, b))
    return params


def pinn_reference(x, params):
    (w1, b1), (w2, b2), (w3, b3) = params
    h = jnp.tanh(x @ w1.T + b1)
    h = jnp.tanh(h @ w2.T + b2)
    return h @ w3.T + b3


if __name__ == "__main__":
    key = jax.random.PRNGKey(0)
    key, kx1, kx2 = jax.random.split(key, 3)
    params = init_params(key)

    # Batch of (t, x)-style collocation points, 2 features each.
    N = 64
    x = jax.random.uniform(kx1, (N, 2), jnp.float32, 20.0, 26.0)

    out = jax.block_until_ready(pinn_forward(x, params))
    ref = pinn_reference(x, params)
    assert out.shape == (N, 1)
    assert jnp.allclose(out, ref, atol=1e-5, rtol=1e-5)

    # Ragged batch (exercises lane padding), mirrors the 100-point linspace.
    N2 = 100
    x2 = jax.random.uniform(kx2, (N2, 2), jnp.float32, 20.0, 26.0)
    out2 = jax.block_until_ready(pinn_forward(x2, params))
    ref2 = pinn_reference(x2, params)
    assert out2.shape == (N2, 1)
    assert jnp.allclose(out2, ref2, atol=1e-5, rtol=1e-5)

    print("KERNEL_OK")
</pallas_src>

<mosaic_0001>
module attributes {stable_mosaic.version = 11 : i64} {
  func.func @pinn_kernel(%arg0: i32, %arg1: memref<2x128xf32, #tpu.memory_space<vmem>>, %arg2: memref<20x2xf32, #tpu.memory_space<vmem>>, %arg3: memref<20x1xf32, #tpu.memory_space<vmem>>, %arg4: memref<20x20xf32, #tpu.memory_space<vmem>>, %arg5: memref<20x1xf32, #tpu.memory_space<vmem>>, %arg6: memref<20x1xf32, #tpu.memory_space<vmem>>, %arg7: memref<1x1xf32, #tpu.memory_space<vmem>>, %arg8: memref<1x128xf32, #tpu.memory_space<vmem>>) attributes {dimension_semantics = [#tpu.dimension_semantics<parallel>], iteration_bounds = array<i64: 1>, scalar_prefetch = 0 : i64, scratch_operands = 0 : i64, tpu.core_type = #tpu.core_type<tc>, window_params = [{transform_indices = @transform_0, window_bounds = array<i64: 2, 128>}, {pipeline_mode = #tpu.pipeline_mode<synchronous>, transform_indices = @transform_1, window_bounds = array<i64: 20, 2>}, {pipeline_mode = #tpu.pipeline_mode<synchronous>, transform_indices = @transform_2, window_bounds = array<i64: 20, 1>}, {pipeline_mode = #tpu.pipeline_mode<synchronous>, transform_indices = @transform_3, window_bounds = array<i64: 20, 20>}, {pipeline_mode = #tpu.pipeline_mode<synchronous>, transform_indices = @transform_4, window_bounds = array<i64: 20, 1>}, {pipeline_mode = #tpu.pipeline_mode<synchronous>, transform_indices = @transform_5, window_bounds = array<i64: 20, 1>}, {pipeline_mode = #tpu.pipeline_mode<synchronous>, transform_indices = @transform_6, window_bounds = array<i64: 1, 1>}, {transform_indices = @transform_7, window_bounds = array<i64: 1, 128>}]} {
    %c0 = arith.constant 0 : index
    %c0_0 = arith.constant 0 : index
    %0 = vector.load %arg1[%c0, %c0_0] : memref<2x128xf32, #tpu.memory_space<vmem>>, vector<2x128xf32>
    %c0_1 = arith.constant 0 : index
    %c0_2 = arith.constant 0 : index
    %1 = vector.load %arg2[%c0_1, %c0_2] : memref<20x2xf32, #tpu.memory_space<vmem>>, vector<20x2xf32>
    %2 = vector.extract_strided_slice %1 {offsets = [0, 0], sizes = [20, 1], strides = [1, 1]} : vector<20x2xf32> to vector<20x1xf32>
    %3 = vector.extract_strided_slice %0 {offsets = [0, 0], sizes = [1, 128], strides = [1, 1]} : vector<2x128xf32> to vector<1x128xf32>
    %4 = vector.broadcast %2 : vector<20x1xf32> to vector<20x128xf32>
    %5 = vector.broadcast %3 : vector<1x128xf32> to vector<20x128xf32>
    %6 = arith.mulf %4, %5 : vector<20x128xf32>
    %7 = vector.extract_strided_slice %1 {offsets = [0, 1], sizes = [20, 1], strides = [1, 1]} : vector<20x2xf32> to vector<20x1xf32>
    %8 = vector.extract_strided_slice %0 {offsets = [1, 0], sizes = [1, 128], strides = [1, 1]} : vector<2x128xf32> to vector<1x128xf32>
    %9 = vector.broadcast %7 : vector<20x1xf32> to vector<20x128xf32>
    %10 = vector.broadcast %8 : vector<1x128xf32> to vector<20x128xf32>
    %11 = arith.mulf %9, %10 : vector<20x128xf32>
    %12 = arith.addf %6, %11 : vector<20x128xf32>
    %c0_3 = arith.constant 0 : index
    %c0_4 = arith.constant 0 : index
    %13 = vector.load %arg3[%c0_3, %c0_4] : memref<20x1xf32, #tpu.memory_space<vmem>>, vector<20x1xf32>
    %14 = vector.broadcast %13 : vector<20x1xf32> to vector<20x128xf32>
    %15 = arith.addf %12, %14 : vector<20x128xf32>
    %16 = math.tanh %15 : vector<20x128xf32>
    %c0_5 = arith.constant 0 : index
    %c0_6 = arith.constant 0 : index
    %17 = vector.load %arg4[%c0_5, %c0_6] : memref<20x20xf32, #tpu.memory_space<vmem>>, vector<20x20xf32>
    %cst = arith.constant dense<0.000000e+00> : vector<20x128xf32>
    %18 = tpu.matmul %17, %16, %cst {dimension_numbers = #tpu.dot_dimension_numbers<[1], [0], [0], [1], [0, 0, 1, 1], [], []>} : vector<20x20xf32>, vector<20x128xf32>, vector<20x128xf32> -> vector<20x128xf32>
    %c0_7 = arith.constant 0 : index
    %c0_8 = arith.constant 0 : index
    %19 = vector.load %arg5[%c0_7, %c0_8] : memref<20x1xf32, #tpu.memory_space<vmem>>, vector<20x1xf32>
    %20 = vector.broadcast %19 : vector<20x1xf32> to vector<20x128xf32>
    %21 = arith.addf %18, %20 : vector<20x128xf32>
    %22 = math.tanh %21 : vector<20x128xf32>
    %c0_9 = arith.constant 0 : index
    %c0_10 = arith.constant 0 : index
    %23 = vector.load %arg6[%c0_9, %c0_10] : memref<20x1xf32, #tpu.memory_space<vmem>>, vector<20x1xf32>
    %24 = vector.broadcast %23 : vector<20x1xf32> to vector<20x128xf32>
    %25 = arith.mulf %24, %22 : vector<20x128xf32>
    %cst_11 = arith.constant dense<0.000000e+00> : vector<128xf32>
    %26 = vector.multi_reduction <add>, %25, %cst_11 [0] : vector<20x128xf32> to vector<128xf32>
    %27 = vector.shape_cast %26 : vector<128xf32> to vector<1x128xf32>
    %c0_12 = arith.constant 0 : index
    %c0_13 = arith.constant 0 : index
    %28 = vector.load %arg7[%c0_12, %c0_13] : memref<1x1xf32, #tpu.memory_space<vmem>>, vector<1x1xf32>
    %29 = vector.broadcast %28 : vector<1x1xf32> to vector<1x128xf32>
    %30 = arith.addf %27, %29 : vector<1x128xf32>
    %c0_14 = arith.constant 0 : index
    %c0_15 = arith.constant 0 : index
    %31 = vector.load %arg8[%c0_14, %c0_15] : memref<1x128xf32, #tpu.memory_space<vmem>>, vector<1x128xf32>
    tpu.vector_store %arg8[%c0_14, %c0_15], %30 {strides = array<i32>} : memref<1x128xf32, #tpu.memory_space<vmem>>, vector<1x128xf32>,
    return
  }
  func.func @transform_0(%arg0: i32) -> (i32, i32) {
    %c0_i32 = arith.constant 0 : i32
    %c0_i32_0 = arith.constant 0 : i32
    return %c0_i32, %arg0 : i32, i32
  }
  func.func @transform_1(%arg0: i32) -> (i32, i32) {
    %c0_i32 = arith.constant 0 : i32
    %c0_i32_0 = arith.constant 0 : i32
    %c0_i32_1 = arith.constant 0 : i32
    return %c0_i32, %c0_i32_0 : i32, i32
  }
  func.func @transform_2(%arg0: i32) -> (i32, i32) {
    %c0_i32 = arith.constant 0 : i32
    %c0_i32_0 = arith.constant 0 : i32
    %c0_i32_1 = arith.constant 0 : i32
    return %c0_i32, %c0_i32_0 : i32, i32
  }
  func.func @transform_3(%arg0: i32) -> (i32, i32) {
    %c0_i32 = arith.constant 0 : i32
    %c0_i32_0 = arith.constant 0 : i32
    %c0_i32_1 = arith.constant 0 : i32
    return %c0_i32, %c0_i32_0 : i32, i32
  }
  func.func @transform_4(%arg0: i32) -> (i32, i32) {
    %c0_i32 = arith.constant 0 : i32
    %c0_i32_0 = arith.constant 0 : i32
    %c0_i32_1 = arith.constant 0 : i32
    return %c0_i32, %c0_i32_0 : i32, i32
  }
  func.func @transform_5(%arg0: i32) -> (i32, i32) {
    %c0_i32 = arith.constant 0 : i32
    %c0_i32_0 = arith.constant 0 : i32
    %c0_i32_1 = arith.constant 0 : i32
    return %c0_i32, %c0_i32_0 : i32, i32
  }
  func.func @transform_6(%arg0: i32) -> (i32, i32) {
    %c0_i32 = arith.constant 0 : i32
    %c0_i32_0 = arith.constant 0 : i32
    %c0_i32_1 = arith.constant 0 : i32
    return %c0_i32, %c0_i32_0 : i32, i32
  }
  func.func @transform_7(%arg0: i32) -> (i32, i32) {
    %c0_i32 = arith.constant 0 : i32
    %c0_i32_0 = arith.constant 0 : i32
    return %c0_i32, %arg0 : i32, i32
  }
}

</mosaic_0001>

<bundles_post_ra>
// kernel: tpu_custom_call.1
= control target key start
LH: loop header
LB: loop body
LE: loop exit
PB: predicated region body
PF: predicated region fallthrough
CT: control target
= control target key end

     0   :  { %s477_s0 = inlined_call_operand.vmem [shape: f32[2,128], index: 0, kind: input, shape index: {}]   ;;  %s478_s1 = inlined_call_operand.vmem [shape: f32[20,2], index: 1, kind: input, shape index: {}]   ;;  %s479_s2 = inlined_call_operand.vmem [shape: f32[20,1], index: 2, kind: input, shape index: {}]   ;;  %s480_s3 = inlined_call_operand.vmem [shape: f32[20,20], index: 3, kind: input, shape index: {}]   ;;  %s481_s4 = inlined_call_operand.vmem [shape: f32[20,1], index: 4, kind: input, shape index: {}]   ;;  %s482_s5 = inlined_call_operand.vmem [shape: f32[20,1], index: 5, kind: input, shape index: {}]   ;;  %s483_s6 = inlined_call_operand.<no memory space> [shape: f32[1,1], index: 6, kind: input, shape index: {}]   ;;  %s484_s7 = inlined_call_operand.hbm [shape: f32[1,128], index: 7, kind: output, shape index: {}]  }
   0x1   :  { %v12_v0 = vstv %s483_s6 }
   0x2   :  { %13 = vst [vmem:[#allocation2] sm:$0x1] %v12_v0 }
   0x3   :  { %v30_v1 = vld [vmem:[%s478_s1] sm:$0xff]  ;;  %v354_v2 = vmov 1   ;;  %v355_v3 = vmov 0   ;;  %v31_v4 = vld [vmem:[%s478_s1 + $0x8] sm:$0xff] }
   0x4   :  { %314 = vset.pattern.permute.xlu1 %v354_v2  ;;  %313 = vset.pattern.permute.xlu0 %v355_v3 }
   0x5   :  { %56 = vperm.xlu1 %314, %v30_v1   ;;  %35 = vperm.xlu0 %313, %v30_v1  }
   0x6   :  { %14 = vsyncpa [#allocation4], 0  ;;  %v77_v5 = vld [vmem:[%s479_s2] sm:$0xff]  ;;  %v78_v6 = vld [vmem:[%s479_s2 + $0x8] sm:$0xff]  ;;  %v356_v11 = vmov 0.0|0.0   ;;  %vm357_vm0 = vmmov 0   ;;  %v48_v18 = vlaneseq }
   0x7   :  { %v32_v7 = vld [vmem:[%s478_s1 + $0x10] sm:$0xf]  ;;  %v105_v9 = vld [vmem:[%s481_s4 + $0x8] sm:$0xff]  ;;  %v219_v10 = vld [vmem:[%s482_s5] sm:$0xff]  ;;  %300 = vmatprep.subr.bf16.mxu0 %v356_v11  ;;  %303 = vmatprep.subr.bf16.mxu1 %v356_v11  ;;  %v358_v13 = vmov 0.0   ;;  %vm132_vm1 = vcmask 1043456  }
   0x8   :  { %v79_v8 = vld [vmem:[%s479_s2 + $0x10] sm:$0xf]  ;;  %291 = vmatprep.mubr.msk.f32.mxu0 %vm357_vm0, %v358_v13  ;;  %294 = vmatprep.mubr.msk.f32.mxu1 %vm357_vm0, %v358_v13  ;;  %v104_v14 = vld [vmem:[%s481_s4] sm:$0xff]  ;;  %v220_v16 = vld [vmem:[%s482_s5 + $0x8] sm:$0xff]  ;;  %v441_v19 = vshrl.u32 %v48_v18, 7  ;;  %vm122_vm2 = vcmask 162816  }
   0x9   :  { %60 = vperm.xlu1 %314, %v31_v4   ;;  %40 = vperm.xlu0 %313, %v31_v4   ;;  %v221_v12 = vld [vmem:[%s482_s5 + $0x10] sm:$0xf]  ;;  %v249_v17 = vld [vmem:[#allocation2] sm:$0x1]  ;;  %v102_v50 = vld [vmem:[%s480_s3 + $0x8] sm:$0xff] }
   0xa   :  { %v106_v15 = vld [vmem:[%s481_s4 + $0x10] sm:$0xf]  ;;  %v69_v20 = vsub.s32 1, %v441_v19  ;;  %v50_v21 = vsub.s32 0, %v441_v19  ;;  %v29_v22 = vld [vmem:[%s477_s0] sm:$0x3] }
   0xb   :  { %v101_v49 = vld [vmem:[%s480_s3] sm:$0xff]  ;;  %v103_v52 = vld [vmem:[%s480_s3 + $0x10] sm:$0xf]  ;;  %s359_s3 = smov [#allocation3]  }
   0xc   :  { %v70_v23 = vrot.slane %v29_v22, %v69_v20  ;;  %v51_v24 = vrot.slane %v29_v22, %v50_v21  ;;  %s267_s29 = sshll.u32 %s359_s3, 4  ;;  %s268_s29 = int_to_ptr.vmem [resolvable:$true] %s267_s29 }
   0xd   :  { %315 = vset.pattern.permute.xlu1 %v355_v3  ;;  %82 = vperm.xlu0 %313, %v77_v5   ;;  %s330_s30 = scalar_lea.vmem %s268_s29, 16  ;;  %s334_s6 = scalar_lea.vmem %s268_s29, 32 }
   0xe   :  { %87 = vperm.xlu1 %315, %v78_v6   ;;  %p331_p0 = scmp.ne.s32.totalorder %s268_s29, %s330_s30  ;;  %p335_p1 = scmp.lt.s32.totalorder %s268_s29, %s268_s29 }
   0xf   :  { %p336_p2 = scmp.lt.s32.totalorder %s334_s6, %s330_s30 }
  0x11   :  { %45 = vperm.xlu0 %313, %v32_v7   ;;  %p337_p3 = por %p336_p2, %p335_p1 }
  0x12   :  { %316 = vset.pattern.permute.xlu1 %v354_v2 }
  0x13   :  { %64 = vperm.xlu1 %316, %v32_v7   ;;  %p338_p4 = pnand %p337_p3, %p331_p0 }
  0x15   :  { %92 = vperm.xlu0 %313, %v79_v8  }
  0x17   :  { %317 = vset.pattern.permute.xlu1 %v355_v3 }
  0x18   :  { %109 = vperm.xlu1 %317, %v104_v14  }
  0x19   :  { %114 = vperm.xlu0 %313, %v105_v9  }
  0x1c   :  { %119 = vperm.xlu1 %317, %v106_v15  }
  0x1d   :  { %224 = vperm.xlu0 %313, %v219_v10  }
  0x20   :  { %229 = vperm.xlu1 %317, %v220_v16  }
  0x21   :  { %234 = vperm.xlu0 %313, %v221_v12  }
  0x24   :  { %252 = vperm.xlu1 %317, %v249_v17  }
  0x84   :  { %v57_v25 = vpop.permute.xlu1 %56  ;;  %v36_v26 = vpop.permute.xlu0 %35 }
  0x85   :  { %v71_v27 = vmul.f32 %v70_v23, %v57_v25  ;;  %v52_v28 = vmul.f32 %v51_v24, %v36_v26 }
  0x87   :  { %v74_v33 = vadd.f32 %v71_v27, %v52_v28 }
  0x88   :  { %v61_v29 = vpop.permute.xlu1 %60  ;;  %v41_v30 = vpop.permute.xlu0 %40 }
  0x89   :  { %v72_v31 = vmul.f32 %v70_v23, %v61_v29  ;;  %v53_v32 = vmul.f32 %v51_v24, %v41_v30 }
  0x8b   :  { %v75_v34 = vadd.f32 %v72_v31, %v53_v32 }
  0x8c   :  { %v83_v35 = vpop.permute.xlu0 %82 }
  0x8d   :  { %v95_v36 = vadd.f32 %v83_v35, %v74_v33  ;;  %v88_v37 = vpop.permute.xlu1 %87 }
  0x8e   :  { %v96_v38 = vadd.f32 %v88_v37, %v75_v34 }
  0x8f   :  { %318 = vtanh.f32 %v95_v36 }
  0x90   :  { %320 = vtanh.f32 %v96_v38  ;;  %v46_v39 = vpop.permute.xlu0 %45 }
  0x91   :  { %v54_v41 = vmul.f32 %v51_v24, %v46_v39 }
  0x92   :  { %v65_v40 = vpop.permute.xlu1 %64 }
  0x93   :  { %v73_v42 = vmul.f32 %v70_v23, %v65_v40 }
  0x94   :  { %v93_v44 = vpop.permute.xlu0 %92 }
  0x95   :  { %v76_v43 = vadd.f32 %v73_v42, %v54_v41 }
  0x97   :  { %v97_v45 = vadd.f32 %v93_v44, %v76_v43  ;;  %v110_v53 = vpop.permute.xlu1 %109 }
  0x98   :  { %v115_v54 = vpop.permute.xlu0 %114 }
  0x99   :  { %v319_v46 = vpop.eup %318  ;;  %322 = vtanh.f32 %v97_v45 }
  0x9a   :  { %v321_v47 = vpop.eup %320 }
  0x9b   :  { %v301_v48 = vpack.c.bf16 %v321_v47, %v319_v46  ;;  %v120_v61 = vpop.permute.xlu1 %119 }
  0x9c   :  { %v225_v1 = vpop.permute.xlu0 %224 }
  0x9d   :  { %302 = vmatpush3.bf16.msra.mxu0 %v301_v48  ;;  %305 = vmatpush3.bf16.msra.mxu1 %v301_v48 }
  0x9e   :  { %289 = vmatprep.subr.mxu0 %v358_v13  ;;  %304 = vmatprep.subr.mxu1 %v358_v13 }
  0x9f   :  { %v230_v4 = vpop.permute.xlu1 %229 }
  0xa0   :  { %v235_v8 = vpop.permute.xlu0 %234 }
  0xa3   :  { %v323_v51 = vpop.eup %322  ;;  %v253_v17 = vpop.permute.xlu1 %252 }
  0xa4   :  { %290 = vmatpush3.msk.msra.mxu0 %vm132_vm1, %v323_v51  ;;  %306 = vmatpush3.msk.msra.mxu1 %vm132_vm1, %v323_v51  ;;  %v258_v20 = vrot.slane %v253_v17, %v50_v21 }
  0xa5   :  { %292 = vmatmul.mubr.msk.f32.vlgmr.msra.gmra.mrb[0].mxu0 %vm122_vm2, %v101_v49  ;;  %295 = vmatmul.mubr.msk.f32.vlgmr.msra.gmra.mrb[0].mxu1 %vm122_vm2, %v102_v50 }
  0xa6   :  { %297 = vmatprep.mubr.msk.f32.mxu1 %vm357_vm0, %v358_v13 }
  0xa9   :  { %298 = vmatmul.mubr.msk.f32.gmra.mrb[2].mxu1 %vm122_vm2, %v103_v52 }
 0x178   :  { %v202_v55 = vpop.f32.mrb[0].mxu0  ;;  %v207_v56 = vpop.f32.mrb[0].mxu1 }
 0x179   :  { %v203_v57 = vadd.f32 %v202_v55, %v110_v53  ;;  %v208_v58 = vadd.f32 %v207_v56, %v115_v54  ;;  %v296_v59 = vpop.f32.mrb[1].mxu1  ;;  %v293_v60 = vpop.f32.mrb[1].mxu0 }
 0x17b   :  { %324 = vtanh.f32 %v203_v57 }
 0x17c   :  { %326 = vtanh.f32 %v208_v58  ;;  %v212_v62 = vpop.f32.mrb[2].mxu1 }
 0x17d   :  { %v213_v63 = vadd.f32 %v212_v62, %v120_v61  ;;  %v299_v0 = vpop.f32.mrb[3].mxu1 }
 0x17f   :  { %328 = vtanh.f32 %v213_v63 }
 0x185   :  { %v325_v2 = vpop.eup %324 }
 0x186   :  { %v327_v3 = vpop.eup %326  ;;  %v237_v5 = vmul.f32 %v325_v2, %v225_v1 }
 0x187   :  { %v238_v6 = vmul.f32 %v327_v3, %v230_v4 }
 0x189   :  { %v329_v7 = vpop.eup %328  ;;  %v240_v9 = vadd.f32 %v238_v6, %v237_v5 }
 0x18a   :  { %v239_v10 = vmul.f32 %v329_v7, %v235_v8 }
 0x18c   :  { %v241_v11 = vsel %vm132_vm1, %v239_v10, 0.0 }
 0x18d   :  { %v242_v12 = vadd.f32 %v241_v11, %v240_v9 }
 0x18f   :  { %v243_v13 = vrot.slane %v242_v12, 4 }
 0x191   :  { %v244_v14 = vadd.f32 %v243_v13, %v242_v12 }
 0x193   :  { %v245_v15 = vrot.slane %v244_v14, 2 }
 0x195   :  { %v246_v16 = vadd.f32 %v245_v15, %v244_v14 }
 0x197   :  { %v247_v18 = vrot.slane %v246_v16, 1 }
 0x199   :  { %v248_v22 = vadd.f32 %v247_v18, %v246_v16 }
 0x19b   :  { %v259_v23 = vadd.f32 %v258_v20, %v248_v22 }
 0x19d   :  { %260 = vst [vmem:[#allocation3] sm:$0x1] %v259_v23 }
 0x19e   :  { %341 = shalt.err (!%p338_p4)
}
 0x19f   :  { %s342_s10 = scalar_lea.hbm %s484_s7, 16 }
 0x1a0   :  { %p343_p5 = scmp.ne.s32.totalorder %s484_s7, %s342_s10  ;;  %p346_p6 = scmp.lt.u32.totalorder %s342_s10, %s484_s7 }
 0x1a2   :  { %p348_p7 = pnand %p346_p6, %p343_p5 }
 0x1a4   :  { %351 = shalt.err (!%p348_p7)
}
 0x1a5   :  { %270 = dma.vmem_to_hbm [thread:$0]  %s268_s29, 16, %s484_s7, [#allocation4]  }
 0x1a6   :  { %352 = dma.done.wait [#allocation4], 16  }
 0x1a7   :  { %353 = vsyncadd [#allocation4], 4294967280 }
 0x1a8   :  { %274 = vsyncpa [#allocation4], 1 }

</bundles_post_ra>
